<compile_context>
chip_gen: v7x
topology: tpu7x:2x2x1
jax: 0.10.0
libtpu: 0.0.40
codegen_flags: <defaults>
</compile_context>

<pallas_src>
import functools
import math

import jax
import jax.numpy as jnp
import numpy as np
from jax import lax
from jax.experimental import pallas as pl
from jax.experimental.pallas import tpu as pltpu


# ---------------------------------------------------------------------------
# Hardware-aware helpers
# ---------------------------------------------------------------------------
def _vmem_capacity_bytes():
    try:
        return int(pltpu.get_tpu_info().vmem_capacity_bytes)
    except Exception:
        return 128 * 1024 * 1024  # v5e/v6e default; conservative fallback


def _largest_divisor_tile(T, cap):
    """Largest power-of-two tile <= cap that divides T (>= 8), else T itself."""
    t = cap
    while t >= 8:
        if T % t == 0:
            return t
        t //= 2
    return T  # tiny sequences: single tile (MXU under-fed, but unavoidable)


def _const_spec(shape):
    """Full-array block whose index never changes -> request single-buffering."""
    idx = lambda *_: (0,) * len(shape)
    try:
        return pl.BlockSpec(shape, idx, pipeline_mode=pl.Buffered(1))
    except Exception:  # older jax without pipeline_mode / Buffered
        return pl.BlockSpec(shape, idx)


# ---------------------------------------------------------------------------
# Pass 1: fused K/V projection. One N=2D matmul per (batch, seq-tile) step.
# Output layout (B, 2, T, D): kv[:, 0] = K, kv[:, 1] = V, stored bf16.
# ---------------------------------------------------------------------------
def _kv_proj_kernel(x_ref, wkv_ref, bkv_ref, kv_ref):
    D = x_ref.shape[-1]
    x = x_ref[0].astype(jnp.bfloat16)                        # (Tq, D)
    kv = (
        jnp.dot(x, wkv_ref[...], preferred_element_type=jnp.float32)
        + bkv_ref[...]
    )                                                        # (Tq, 2D) f32
    kv_ref[0, 0] = kv[:, :D].astype(kv_ref.dtype)            # K tile
    kv_ref[0, 1] = kv[:, D:].astype(kv_ref.dtype)            # V tile


# ---------------------------------------------------------------------------
# Pass 2: Q proj + flash attention + out-proj + LN1 + FFN + LN2.
# Grid: (B, T//Tq, T//Tk); KV axis is the (last, "arbitrary") reduction axis.
# ---------------------------------------------------------------------------
def _attn_ffn_kernel(
    x_ref, kv_ref,
    wq_ref, bq_ref,
    wo_ref, bo_ref,
    g1_ref, beta1_ref,
    w1_ref, b1_ref,
    w2_ref, b2_ref,
    g2_ref, beta2_ref,
    o_ref,
    q_sc, m_sc, l_sc, acc_sc,
    *, inv_sqrt_d,
):
    eps = 1e-5
    kv_step = pl.program_id(2)

    @pl.when(kv_step == 0)
    def _():
        # Q projection from the x tile already resident in VMEM (no Q HBM trip).
        xb = x_ref[0].astype(jnp.bfloat16)                   # (Tq, D)
        q_sc[...] = (
            jnp.dot(xb, wq_ref[...], preferred_element_type=jnp.float32)
            + bq_ref[...]
        ).astype(jnp.bfloat16)
        m_sc[...] = jnp.full(m_sc.shape, -jnp.inf, jnp.float32)
        l_sc[...] = jnp.zeros(l_sc.shape, jnp.float32)
        acc_sc[...] = jnp.zeros(acc_sc.shape, jnp.float32)

    q = q_sc[...]                                            # (Tq, D) bf16
    k = kv_ref[0, 0]                                         # (Tk, D) bf16
    v = kv_ref[0, 1]                                         # (Tk, D) bf16

    # scores = Q @ K^T / sqrt(D): contract on D of both operands (NT matmul,
    # no explicit transpose / XLU pass).
    s = lax.dot_general(
        q, k,
        dimension_numbers=(((1,), (1,)), ((), ())),
        preferred_element_type=jnp.float32,
    ) * inv_sqrt_d                                           # (Tq, Tk) f32

    # Online (flash) softmax accumulation in f32.
    m_new = jnp.maximum(m_sc[...], jnp.max(s, axis=-1, keepdims=True))
    alpha = jnp.exp(m_sc[...] - m_new)
    p = jnp.exp(s - m_new)
    l_sc[...] = alpha * l_sc[...] + jnp.sum(p, axis=-1, keepdims=True)
    acc_sc[...] = alpha * acc_sc[...] + jnp.dot(
        p.astype(jnp.bfloat16), v, preferred_element_type=jnp.float32
    )
    m_sc[...] = m_new

    @pl.when(kv_step == pl.num_programs(2) - 1)
    def _():
        # Finalize softmax (EUP reciprocal), out-proj, residual+LN1, FFN, LN2.
        attn = acc_sc[...] * pl.reciprocal(l_sc[...], approx=True)   # (Tq, D)
        attn = jnp.dot(attn.astype(jnp.bfloat16), wo_ref[...],
                       preferred_element_type=jnp.float32) + bo_ref[...]
        # dropout(p=0.1) -> identity in eval mode.

        x = x_ref[0]                                        # (Tq, D) f32
        h = x + attn
        mu = jnp.mean(h, axis=-1, keepdims=True)
        var = jnp.mean((h - mu) * (h - mu), axis=-1, keepdims=True)
        h = (h - mu) * lax.rsqrt(var + eps)
        h = h * g1_ref[...] + beta1_ref[...]

        ff = jnp.dot(h.astype(jnp.bfloat16), w1_ref[...],
                     preferred_element_type=jnp.float32) + b1_ref[...]
        ff = jnp.maximum(ff, 0.0)                           # ReLU
        ff = jnp.dot(ff.astype(jnp.bfloat16), w2_ref[...],
                     preferred_element_type=jnp.float32) + b2_ref[...]
        # dropout(p=0.1) -> identity in eval mode.

        y = h + ff
        mu2 = jnp.mean(y, axis=-1, keepdims=True)
        var2 = jnp.mean((y - mu2) * (y - mu2), axis=-1, keepdims=True)
        y = (y - mu2) * lax.rsqrt(var2 + eps)
        y = y * g2_ref[...] + beta2_ref[...]

        o_ref[0] = y.astype(o_ref.dtype)


# ---------------------------------------------------------------------------
# Wrapper
# ---------------------------------------------------------------------------
def transformer_block(x, params, *, q_tile=None, kv_tile=None):
    """x: (B, T, D) float32; params: dict of weights (see init_params)."""
    B, T, D = x.shape
    F = params["w_ff1"].shape[-1]

    vmem_cap = _vmem_capacity_bytes()
    vmem_limit = int(vmem_cap * 0.75)          # headroom for Mosaic scratch/sems
    # Generation-aware tiles: 128 MiB parts (v5e/v6e) afford larger q-tiles,
    # 64 MiB (v7x) capped lower. KV tile capped at 512.
    tq_cap = 1024 if vmem_cap >= 100 * (1 << 20) else 512
    Tq = q_tile or _largest_divisor_tile(T, tq_cap)
    Tk = kv_tile or _largest_divisor_tile(T, 512)
    assert T % Tq == 0 and T % Tk == 0, "T must be divisible by the tile sizes"
    nqt, nkv = T // Tq, T // Tk

    # -------------------- Pass 1: fused K/V projection --------------------
    kv_cost = pl.CostEstimate(
        flops=2 * B * T * D * 2 * D,
        transcendentals=0,
        bytes_accessed=(B * T * D * 4            # x (f32)
                        + D * 2 * D * 2          # wkv (bf16)
                        + 2 * D * 4              # bkv (f32)
                        + B * T * 2 * D * 2),    # kv out (bf16)
    )
    kv = pl.pallas_call(
        _kv_proj_kernel,
        out_shape=jax.ShapeDtypeStruct((B, 2, T, D), jnp.bfloat16),
        grid_spec=pltpu.PrefetchScalarGridSpec(
            num_scalar_prefetch=0,
            grid=(B, nqt),
            in_specs=[
                pl.BlockSpec((1, Tq, D), lambda b, i: (b, i, 0)),   # x tile
                _const_spec((D, 2 * D)),                            # wkv
                _const_spec((1, 2 * D)),                            # bkv
            ],
            out_specs=pl.BlockSpec((1, 2, Tq, D), lambda b, i: (b, 0, i, 0)),
        ),
        compiler_params=pltpu.CompilerParams(
            dimension_semantics=("parallel", "parallel"),
            vmem_limit_bytes=vmem_limit,
        ),
        cost_estimate=kv_cost,
    )(x, params["wkv"], params["bkv"])

    # ---- Pass 2: Q proj + flash attention + LN1 + FFN + LN2 (q/kv-tiled) ----
    attn_cost = pl.CostEstimate(
        flops=B * (4 * T * T * D + 4 * T * D * D + 4 * T * D * F),
        transcendentals=B * T * T,
        bytes_accessed=(B * T * D * 4                     # x (f32)
                        + B * T * 2 * D * 2 * max(nqt, 1) # kv re-read per q-tile
                        + (2 * D * D + 2 * D * F) * 2     # wq, wo, w_ff1, w_ff2
                        + (8 * D + F) * 4                 # biases + LN params
                        + B * T * D * 4),                 # output (f32)
    )
    kernel2 = functools.partial(
        _attn_ffn_kernel, inv_sqrt_d=float(1.0 / math.sqrt(D))
    )
    out = pl.pallas_call(
        kernel2,
        out_shape=jax.ShapeDtypeStruct((B, T, D), jnp.float32),
        grid_spec=pltpu.PrefetchScalarGridSpec(
            num_scalar_prefetch=0,
            grid=(B, nqt, nkv),
            in_specs=[
                pl.BlockSpec((1, Tq, D), lambda b, i, kv: (b, i, 0)),      # x tile
                pl.BlockSpec((1, 2, Tk, D), lambda b, i, kv: (b, 0, kv, 0)),  # K/V tile
                _const_spec((D, D)), _const_spec((1, D)),                  # q_proj
                _const_spec((D, D)), _const_spec((1, D)),                  # out_proj
                _const_spec((1, D)), _const_spec((1, D)),                  # norm1
                _const_spec((D, F)), _const_spec((1, F)),                  # ff linear1
                _const_spec((F, D)), _const_spec((1, D)),                  # ff linear2
                _const_spec((1, D)), _const_spec((1, D)),                  # norm2
            ],
            out_specs=pl.BlockSpec((1, Tq, D), lambda b, i, kv: (b, i, 0)),
            scratch_shapes=[
                pltpu.VMEM((Tq, D), jnp.bfloat16),   # q tile
                pltpu.VMEM((Tq, 1), jnp.float32),    # running max m
                pltpu.VMEM((Tq, 1), jnp.float32),    # running denom l
                pltpu.VMEM((Tq, D), jnp.float32),    # attention accumulator
            ],
        ),
        compiler_params=pltpu.CompilerParams(
            dimension_semantics=("parallel", "parallel", "arbitrary"),
            vmem_limit_bytes=vmem_limit,
        ),
        cost_estimate=attn_cost,
    )(
        x, kv,
        params["wq"], params["bq"],
        params["wo"], params["bo"],
        params["g1"], params["beta1"],
        params["w_ff1"], params["b_ff1"],
        params["w_ff2"], params["b_ff2"],
        params["g2"], params["beta2"],
    )
    return out


def init_params(key, D, F):
    """Deterministic synthetic parameters.

    Matmul weights stored as (in, out) in bf16 (halves HBM/VMEM traffic and
    feeds the MXU at full rate); biases and LayerNorm params stay f32.
    K/V weights/biases are pre-fused into (D, 2D) / (1, 2D); Q is separate
    because its projection runs inside pass 2.
    """
    ks = jax.random.split(key, 10)
    s = 0.05
    w = lambda k, shape: (jax.random.normal(k, shape, jnp.float32) * s).astype(
        jnp.bfloat16
    )
    b = lambda k, shape: jax.random.normal(k, shape, jnp.float32) * s
    return {
        "wq": w(ks[0], (D, D)),
        "bq": b(ks[1], (1, D)),
        "wkv": w(ks[2], (D, 2 * D)),
        "bkv": b(ks[3], (1, 2 * D)),
        "wo": w(ks[4], (D, D)),
        "bo": b(ks[5], (1, D)),
        "g1": jnp.ones((1, D), jnp.float32),
        "beta1": jnp.zeros((1, D), jnp.float32),
        "w_ff1": w(ks[6], (D, F)),
        "b_ff1": b(ks[7], (1, F)),
        "w_ff2": w(ks[8], (F, D)),
        "b_ff2": b(ks[9], (1, D)),
        "g2": jnp.ones((1, D), jnp.float32),
        "beta2": jnp.zeros((1, D), jnp.float32),
    }


def _reference(x, p):
    """Pure-JAX f32 reference of the PyTorch forward (eval mode)."""
    D = x.shape[-1]
    eps = 1e-5
    f32 = lambda a: a.astype(jnp.float32)

    def ln(h, g, b):
        mu = jnp.mean(h, axis=-1, keepdims=True)
        var = jnp.mean((h - mu) ** 2, axis=-1, keepdims=True)
        return (h - mu) / jnp.sqrt(var + eps) * g + b

    q = x @ f32(p["wq"]) + p["bq"]
    kvp = x @ f32(p["wkv"]) + p["bkv"]
    k, v = kvp[..., :D], kvp[..., D:]
    scores = jnp.einsum("btd,bsd->bts", q, k) / jnp.sqrt(jnp.float32(D))
    w = jax.nn.softmax(scores, axis=-1)
    attn = jnp.einsum("bts,bsd->btd", w, v) @ f32(p["wo"]) + p["bo"]
    h = ln(x + attn, p["g1"], p["beta1"])
    ff = jnp.maximum(h @ f32(p["w_ff1"]) + p["b_ff1"], 0.0) @ f32(p["w_ff2"]) + p["b_ff2"]
    return ln(h + ff, p["g2"], p["beta2"])


if __name__ == "__main__":
    B, T, D, F = 2, 8, 32, 64
    num_heads = 4  # unused by the reference math (heads are never split)

    key = jax.random.PRNGKey(0)
    kx, kp = jax.random.split(key)
    x = jax.random.normal(kx, (B, T, D), jnp.float32)
    params = init_params(kp, D, F)

    out = jax.block_until_ready(transformer_block(x, params))
    ref = jax.block_until_ready(_reference(x, params))

    # bf16 matmul inputs + approx reciprocal -> looser tolerance than pure f32.
    np.testing.assert_allclose(np.asarray(out), np.asarray(ref), rtol=3e-2, atol=3e-2)

    print("KERNEL_OK")
</pallas_src>

<mosaic_0001>
module attributes {stable_mosaic.version = 11 : i64} {
  func.func @_kv_proj_kernel(%arg0: i32, %arg1: i32, %arg2: memref<1x8x32xf32, #tpu.memory_space<vmem>>, %arg3: memref<32x64xbf16, #tpu.memory_space<vmem>>, %arg4: memref<1x64xf32, #tpu.memory_space<vmem>>, %arg5: memref<1x2x8x32xbf16, #tpu.memory_space<vmem>>) attributes {dimension_semantics = [#tpu.dimension_semantics<parallel>, #tpu.dimension_semantics<parallel>], iteration_bounds = array<i64: 2, 1>, scalar_prefetch = 0 : i64, scratch_operands = 0 : i64, tpu.core_type = #tpu.core_type<tc>, window_params = [{transform_indices = @transform_0, window_bounds = array<i64: 1, 8, 32>}, {pipeline_mode = #tpu.pipeline_mode<synchronous>, transform_indices = @transform_1, window_bounds = array<i64: 32, 64>}, {pipeline_mode = #tpu.pipeline_mode<synchronous>, transform_indices = @transform_2, window_bounds = array<i64: 1, 64>}, {transform_indices = @transform_3, window_bounds = array<i64: 1, 2, 8, 32>}]} {
    %c0 = arith.constant 0 : index
    %c0_0 = arith.constant 0 : index
    %c0_1 = arith.constant 0 : index
    %0 = vector.load %arg2[%c0, %c0_0, %c0_1] : memref<1x8x32xf32, #tpu.memory_space<vmem>>, vector<1x8x32xf32>
    %1 = vector.shape_cast %0 : vector<1x8x32xf32> to vector<8x32xf32>
    %2 = arith.truncf %1 : vector<8x32xf32> to vector<8x32xbf16>
    %c0_2 = arith.constant 0 : index
    %c0_3 = arith.constant 0 : index
    %3 = vector.load %arg3[%c0_2, %c0_3] : memref<32x64xbf16, #tpu.memory_space<vmem>>, vector<32x64xbf16>
    %cst = arith.constant dense<0.000000e+00> : vector<8x64xf32>
    %4 = tpu.matmul %2, %3, %cst {dimension_numbers = #tpu.dot_dimension_numbers<[1], [0], [0], [1], [0, 0, 1, 1], [], []>} : vector<8x32xbf16>, vector<32x64xbf16>, vector<8x64xf32> -> vector<8x64xf32>
    %c0_4 = arith.constant 0 : index
    %c0_5 = arith.constant 0 : index
    %5 = vector.load %arg4[%c0_4, %c0_5] : memref<1x64xf32, #tpu.memory_space<vmem>>, vector<1x64xf32>
    %6 = vector.broadcast %5 : vector<1x64xf32> to vector<8x64xf32>
    %7 = arith.addf %4, %6 : vector<8x64xf32>
    %8 = vector.extract_strided_slice %7 {offsets = [0, 0], sizes = [8, 32], strides = [1, 1]} : vector<8x64xf32> to vector<8x32xf32>
    %9 = arith.truncf %8 : vector<8x32xf32> to vector<8x32xbf16>
    %c0_6 = arith.constant 0 : index
    %c0_7 = arith.constant 0 : index
    %c0_8 = arith.constant 0 : index
    %c0_9 = arith.constant 0 : index
    %10 = vector.load %arg5[%c0_6, %c0_7, %c0_8, %c0_9] : memref<1x2x8x32xbf16, #tpu.memory_space<vmem>>, vector<1x1x8x32xbf16>
    %11 = vector.shape_cast %10 : vector<1x1x8x32xbf16> to vector<8x32xbf16>
    %12 = vector.shape_cast %9 : vector<8x32xbf16> to vector<1x1x8x32xbf16>
    tpu.vector_store %arg5[%c0_6, %c0_7, %c0_8, %c0_9], %12 {strides = array<i32>} : memref<1x2x8x32xbf16, #tpu.memory_space<vmem>>, vector<1x1x8x32xbf16>,
    %13 = vector.extract_strided_slice %7 {offsets = [0, 32], sizes = [8, 32], strides = [1, 1]} : vector<8x64xf32> to vector<8x32xf32>
    %14 = arith.truncf %13 : vector<8x32xf32> to vector<8x32xbf16>
    %c0_10 = arith.constant 0 : index
    %c1 = arith.constant 1 : index
    %c0_11 = arith.constant 0 : index
    %c0_12 = arith.constant 0 : index
    %15 = vector.load %arg5[%c0_10, %c1, %c0_11, %c0_12] : memref<1x2x8x32xbf16, #tpu.memory_space<vmem>>, vector<1x1x8x32xbf16>
    %16 = vector.shape_cast %15 : vector<1x1x8x32xbf16> to vector<8x32xbf16>
    %17 = vector.shape_cast %14 : vector<8x32xbf16> to vector<1x1x8x32xbf16>
    tpu.vector_store %arg5[%c0_10, %c1, %c0_11, %c0_12], %17 {strides = array<i32>} : memref<1x2x8x32xbf16, #tpu.memory_space<vmem>>, vector<1x1x8x32xbf16>,
    return
  }
  func.func @transform_0(%arg0: i32, %arg1: i32) -> (i32, i32, i32) {
    %c0_i32 = arith.constant 0 : i32
    %c0_i32_0 = arith.constant 0 : i32
    return %arg0, %arg1, %c0_i32 : i32, i32, i32
  }
  func.func @transform_1(%arg0: i32, %arg1: i32) -> (i32, i32) {
    %c0_i32 = arith.constant 0 : i32
    %c0_i32_0 = arith.constant 0 : i32
    %c0_i32_1 = arith.constant 0 : i32
    return %c0_i32, %c0_i32_0 : i32, i32
  }
  func.func @transform_2(%arg0: i32, %arg1: i32) -> (i32, i32) {
    %c0_i32 = arith.constant 0 : i32
    %c0_i32_0 = arith.constant 0 : i32
    %c0_i32_1 = arith.constant 0 : i32
    return %c0_i32, %c0_i32_0 : i32, i32
  }
  func.func @transform_3(%arg0: i32, %arg1: i32) -> (i32, i32, i32, i32) {
    %c0_i32 = arith.constant 0 : i32
    %c0_i32_0 = arith.constant 0 : i32
    %c0_i32_1 = arith.constant 0 : i32
    return %arg0, %c0_i32, %arg1, %c0_i32_0 : i32, i32, i32, i32
  }
}

</mosaic_0001>

<bundles_post_ra>
// kernel: tpu_custom_call.1
= control target key start
LH: loop header
LB: loop body
LE: loop exit
PB: predicated region body
PF: predicated region fallthrough
CT: control target
= control target key end

     0   :  { %8 = vsyncpa [#allocation3], 0  ;;  %s1020_s0 = inlined_call_operand.hbm [shape: f32[2,8,32], index: 0, kind: input, shape index: {}]   ;;  %s1021_s1 = inlined_call_operand.hbm [shape: bf16[32,64], index: 1, kind: input, shape index: {}]   ;;  %s1022_s2 = inlined_call_operand.hbm [shape: f32[1,64], index: 2, kind: input, shape index: {}]   ;;  %s1023_s3 = inlined_call_operand.hbm [shape: bf16[2,2,8,32], index: 3, kind: output, shape index: {}]  }
   0x1   :  { %10 = vsyncpa [#allocation3 + $0x1], 0 }
   0x2   :  { %11 = vsyncpa [#allocation6], 0 }
   0x3   :  { %12 = vsyncpa [#allocation4], 0 }
   0x4   :  { %14 = vsyncpa [#allocation4 + $0x1], 0  ;;  %s763_s12 = smov 0   ;;  %s765_s13 = smov 0  }
   0x5   :  { %s767_s14 = smov 0   ;;  %s769_s15 = smov 0  }
   0x6   :  { %s771_s16 = smov 0   ;;  %s773_s17 = smov 0  }
   0x7 LB: > { %s429_s18 = sadd.s32 4294967295, %s730_s17   ;;  %s430_s19 = sadd.s32 4294967294, %s730_s17   ;;  %s730_s17 = sphi %s773_s17, %s20_s17   ;;  %s726_s16 = sphi %s771_s16, %s1045_s16   ;;  %s722_s15 = sphi %s769_s15, %s1044_s15   ;;  %s718_s14 = sphi %s767_s14, %s1043_s14   ;;  %s714_s13 = sphi %s765_s13, %s1042_s13   ;;  %s710_s12 = sphi %s763_s12, %s1041_s12  }
   0x8   : > { %p54_p0 = scmp.ne.s32.totalorder %s714_s13, %s710_s12  ;;  %p797_p1 = scmp.eq.s32.totalorder %s429_s18, 0 }
   0x9   : > { %p801_p2 = scmp.eq.s32.totalorder %s429_s18, 1  ;;  %p128_p3 = scmp.eq.s32.totalorder %s430_s19, 1 }
   0xa   : > { %s1028_s20 = scalar_select %p797_p1, 1, 0 }
   0xb   : > { %p807_p4 = por %p797_p1, %p54_p0  ;;  %p431_p5 = scmp.ge.s32.totalorder %s730_s17, 1 }
   0xc   : > { %p812_p6 = por %p128_p3, %p54_p0  ;;  %p135_p7 = scmp.lt.s32.totalorder %s730_s17, 3 }
   0xd   : > { %s1030_s22 = scalar_select %p807_p4, 1, 0 }
   0xe   : > { %s1031_s23 = scalar_select %p812_p6, 1, 0 }
   0xf   : > { %p817_p8 = pnand %p431_p5, %p135_p7  ;;  %s732_s25 = smov [#allocation5]  }
  0x10   : > { %s147_s26 = sshll.u32 %s732_s25, 4  ;;  %s733_s28 = smov [#allocation7]   ;;  %s821_s26 = int_to_ptr.vmem [resolvable:$true] %s147_s26 }
  0x11   : > { %p478_p9 = pneg %p817_p8  ;;  %s161_s29 = sshll.u32 %s733_s28, 4  ;;  %s832_s29 = int_to_ptr.vmem [resolvable:$true] %s161_s29 }
  0x12   : > { %s558_s5 = scalar_lea.hbm %s1021_s1, 256 }
  0x13   : > { %p828_p11 = pnand %p478_p9, %p797_p1  ;;  %p559_p12 = scmp.ne.s32.totalorder %s1021_s1, %s558_s5 }
  0x14   : > { %p565_p5 = scmp.lt.u32.totalorder %s558_s5, %s1021_s1 }
  0x15   : > { %p560_p13 = pneg %p828_p11 }
  0x17   : > { %p561_p0 = pnand %p560_p13, %p559_p12 }
  0x19   : > { %p562_p3 = pneg %p561_p0 }
  0x1b   : > { %p567_p7 = pnand %p565_p5, %p562_p3 }
  0x1d   : > { %570 = shalt.err (!%p567_p7)
}
  0x1e   : > { %s571_s10 = scalar_lea.vmem %s821_s26, 256  ;;  %p579_p1 = scmp.lt.s32.totalorder %s821_s26, %s821_s26 }
  0x1f   : > { %p572_p9 = scmp.ne.s32.totalorder %s821_s26, %s571_s10  ;;  %p580_p12 = scmp.lt.s32.totalorder %s571_s10, %s571_s10 }
  0x21   : > { %p574_p10 = pnand %p572_p9, %p560_p13  ;;  %p581_p0 = por %p580_p12, %p579_p1 }
  0x23   : > { %p575_p6 = pneg %p574_p10 }
  0x25   : > { %p582_p4 = pnand %p581_p0, %p575_p6 }
  0x27   : > { %585 = shalt.err (!%p582_p4)
}
  0x28   : > { %s734_s11 = smov 64   ;;  %s735_s18 = smov 4  }
  0x29   : > { %481 = dma.hbm_to_vmem [thread:$0]  (!%p828_p11), %s1021_s1, 256, %s821_s26, [#allocation6], %s734_s11, %s734_s11, %s735_s18  }
  0x2a   : > { %s586_s4 = scalar_lea.hbm %s1022_s2, 16 }
  0x2b   : > { %p587_p1 = scmp.ne.s32.totalorder %s1022_s2, %s586_s4  ;;  %p593_p10 = scmp.lt.u32.totalorder %s586_s4, %s1022_s2 }
  0x2d   : > { %p589_p4 = pnand %p587_p1, %p560_p13 }
  0x2f   : > { %p590_p6 = pneg %p589_p4 }
  0x31   : > { %p595_p3 = pnand %p593_p10, %p590_p6 }
  0x33   : > { %598 = shalt.err (!%p595_p3)
}
  0x34   : > { %s599_s26 = scalar_lea.vmem %s832_s29, 16  ;;  %s606_s9 = scalar_lea.vmem %s832_s29, 32 }
  0x35   : > { %p600_p5 = scmp.ne.s32.totalorder %s832_s29, %s599_s26  ;;  %p607_p12 = scmp.lt.s32.totalorder %s832_s29, %s832_s29 }
  0x36   : > { %p608_p0 = scmp.lt.s32.totalorder %s606_s9, %s599_s26 }
  0x37   : > { %p602_p7 = pnand %p600_p5, %p560_p13 }
  0x38   : > { %p609_p1 = por %p608_p0, %p607_p12 }
  0x39   : > { %p603_p9 = pneg %p602_p7 }
  0x3b   : > { %p610_p4 = pnand %p609_p1, %p603_p9 }
  0x3d   : > { %613 = shalt.err (!%p610_p4)
}
  0x3e   : > { %484 = dma.hbm_to_vmem [thread:$0]  (!%p828_p11), %s1022_s2, 16, %s832_s29, [#allocation6]  }
  0x3f   : > { %s32_s18 = sadd.s32 1, %s726_s16  ;;  %s41_s19 = sadd.s32 1, %s718_s14 }
  0x40   : > { %p34_p13 = scmp.ge.s32.totalorder %s32_s18, 2  ;;  %p48_p6 = scmp.ne.s32.totalorder %s718_s14, %s714_s13 }
  0x41   : > { %p49_p10 = scmp.eq.s32.totalorder %s730_s17, 0  ;;  %p495_p3 = scmp.lt.s32.totalorder %s730_s17, 2 }
  0x42   : > { %s1047_s18 = smov (%p34_p13, %s32_s18), 0  ;;  %p897_p7 = por %p801_p2, %p48_p6 }
  0x43   : > { %p50_p5 = por %p49_p10, %p48_p6  ;;  %s36_s25 = ssub.s32 %s726_s16, %s1047_s18 }
  0x44   : > { %s1034_s27 = scalar_select %p897_p7, 1, 0 }
  0x45   : > { %s172_s28 = sand.u32 1, %s718_s14   ;;  %p39_p9 = scmp.eq.s32.totalorder %s36_s25, 0 }
  0x46   : > { %s435_s29 = sshll.u32 %s172_s28, 3  ;;  %s436_s30 = sshll.u32 %s726_s16, 7 }
  0x47   : > { %s906_s4 = scalar_select %p39_p9, %s718_s14, %s41_s19  }
  0x48   : > { %s911_s7 = scalar_lea.hbm %s1020_s0, %s436_s30  ;;  %s176_s21 = scalar_lea.vmem [#allocation2], %s435_s29 }
  0x49   : > { %s184_s8 = sshll.u32 %s176_s21, 4  ;;  %p915_p2 = pnand %p495_p3, %p50_p5  ;;  %s919_s8 = int_to_ptr.vmem [resolvable:$true] %s184_s8 }
  0x4a   : > { %s173_s9 = scalar_lea.sflag [#allocation3], %s172_s28  ;;  %s614_s10 = scalar_lea.hbm %s911_s7, 128 }
  0x4b   : > { %p615_p11 = scmp.ne.s32.totalorder %s911_s7, %s614_s10  ;;  %p616_p12 = pneg %p915_p2 }
  0x4c   : > { %s619_s25 = scalar_lea.hbm %s1020_s0, 256  ;;  %p620_p4 = scmp.lt.u32.totalorder %s911_s7, %s1020_s0 }
  0x4d   : > { %p617_p0 = pnand %p616_p12, %p615_p11  ;;  %p621_p13 = scmp.lt.u32.totalorder %s619_s25, %s614_s10 }
  0x4e   : > { %p623_p10 = scmp.lt.u32.totalorder %s614_s10, %s911_s7 }
  0x4f   : > { %p618_p1 = pneg %p617_p0  ;;  %p622_p6 = por %p621_p13, %p620_p4 }
  0x51   : > { %p624_p3 = por %p623_p10, %p622_p6 }
  0x53   : > { %p625_p5 = pnand %p624_p3, %p618_p1 }
  0x55   : > { %628 = shalt.err (!%p625_p5)
}
  0x56   : > { %s629_s28 = scalar_lea.vmem %s919_s8, 128  ;;  %s736_s5 = smov [#allocation2]  }
  0x57   : > { %p630_p9 = scmp.ne.s32.totalorder %s919_s8, %s629_s28  ;;  %s634_s6 = sshll.u32 %s736_s5, 4  ;;  %s635_s6 = int_to_ptr.vmem [resolvable:$false] %s634_s6 }
  0x58   : > { %s636_s21 = scalar_lea.vmem %s635_s6, 256  ;;  %p637_p7 = scmp.lt.s32.totalorder %s919_s8, %s635_s6 }
  0x59   : > { %p632_p11 = pnand %p630_p9, %p616_p12  ;;  %p638_p4 = scmp.lt.s32.totalorder %s636_s21, %s629_s28 }
  0x5b   : > { %p633_p0 = pneg %p632_p11  ;;  %p639_p13 = por %p638_p4, %p637_p7 }
  0x5d   : > { %p640_p6 = pnand %p639_p13, %p633_p0 }
  0x5f   : > { %643 = shalt.err (!%p640_p6)
}
  0x60   : > { %488 = dma.hbm_to_vmem [thread:$0]  (!%p915_p2), %s911_s7, 128, %s919_s8, %s173_s9  }
  0x61   : > { %193 = sbr.rel (%p817_p8) target bundleno = 463 (0x1cf), region = 32  ;;  %s949_s10 = sand.u32 (!%p817_p8), 1, %s714_s13  }
  0x62   : > { %s438_s11 = sshll.u32 (!%p817_p8), %s949_s10, 3  ;;  %s196_s19 = scalar_lea.sflag (!%p817_p8), [#allocation3], %s949_s10 }
  0x63   : > { %s199_s25 = scalar_lea.vmem (!%p817_p8), [#allocation2], %s438_s11  ;;  %p1036_p7 = scmp.ne.s32.totalorder (!%p817_p8), %s1030_s22, 0 }
  0x68   : > { %697 = dma.done.wait (%p1036_p7), %s196_s19, 128  }
  0x69   : > { %699 = vsyncadd (%p1036_p7), %s196_s19, 4294967168  ;;  %p1037_p2 = scmp.ne.s32.totalorder %s1028_s20, 0 }
  0x6b   : > { %701 = dma.done.wait (%p1037_p2), [#allocation6], 272  }
  0x6c   : > { %703 = vsyncadd (%p1037_p2), [#allocation6], 4294967024  ;;  %v737_v0 = vmov 0.0   ;;  %vm738_vm0 = vmmov 0   ;;  %v556_v1 = vld [vmem:[#allocation5] sm:$0xff]   ;;  %v557_v2 = vld [vmem:[#allocation5 + $0x8] sm:$0xff]  }
  0x6d   : > { %458 = vmatprep.subr.bf16.mxu0 %v737_v0  ;;  %462 = vmatprep.mubr.msk.bf16.mxu0 %vm738_vm0, %v737_v0  ;;  %v231_v3 = vld [vmem:[%s199_s25] sm:$0xff]  ;;  %vm256_vm1 = vcmask 261120   ;;  %vm301_vm2 = vcmask 257024   ;;  %s739_s20 = smov 96   ;;  %s229_s22 = scalar_lea.vmem [#allocation8], %s438_s11 }
  0x6e   : > { %459 = vmatpush3.bf16.msra.mxu0 %v556_v1  ;;  %v232_v4 = vpack.c.bf16 %v231_v3, %v231_v3  ;;  %v442_v5 = vld [vmem:[#allocation7] ss:$0 sm:$0xff]  ;;  %s326_s24 = sshll.u32 %s229_s22, 4  ;;  %s454_s7 = sshll.u32 %s722_s15, 7  ;;  %s966_s24 = int_to_ptr.vmem [resolvable:$true] %s326_s24 }
  0x6f   : > { %460 = vmatprep.subr.bf16.mxu0 %v737_v0  ;;  %s971_s9 = scalar_lea.hbm %s1023_s3, %s454_s7  ;;  %s312_s29 = scalar_lea.sflag [#allocation4], %s949_s10 }
  0x70   : > { %s644_s30 = scalar_lea.vmem %s966_s24, 128  ;;  %p1038_p12 = scmp.ne.s32.totalorder %s1034_s27, 0 }
  0x71   : > { %p645_p8 = scmp.ne.s32.totalorder %s966_s24, %s644_s30  ;;  %s740_s28 = smov [#allocation8]  }
  0x72   : > { %461 = vmatpush3.bf16.msra.mxu0 %v557_v2  ;;  %s648_s15 = sshll.u32 %s740_s28, 4  ;;  %s649_s15 = int_to_ptr.vmem [resolvable:$false] %s648_s15 }
  0x73   : > { %p646_p1 = pnand %p645_p8, %p1038_p12  ;;  %s650_s5 = scalar_lea.vmem %s649_s15, 256 }
  0x74   : > { %p651_p3 = scmp.lt.s32.totalorder %s966_s24, %s649_s15  ;;  %p652_p5 = scmp.lt.s32.totalorder %s650_s5, %s644_s30 }
  0x75   : > { %463 = vmatmul.mubr.msk.bf16.vlgmr.msra.gmra.mrb[0].mxu0 %vm256_vm1, %v232_v4  ;;  %p647_p10 = pneg %p646_p1 }
  0x76   : > { %p653_p9 = por %p652_p5, %p651_p3 }
  0x78   : > { %p654_p11 = pnand %p653_p9, %p647_p10 }
 0x148   : > { %v294_v6 = vpop.f32.mrb[0].mxu0 }
 0x149   : > { %v295_v7 = vadd.f32 %v442_v5, %v294_v6  ;;  %v464_v8 = vpop.f32.mrb[1].mxu0 }
 0x14a   : > { %v297_v9 = vpop.f32.mrb[2].mxu0 }
 0x14b   : > { %v300_v10 = vpack.c.bf16 %v295_v7, %v295_v7  ;;  %v465_v11 = vpop.f32.mrb[3].mxu0 }
 0x14d   : > { %306 = vrot.lane.b32.xlu0 %v300_v10, %s739_s20  ;;  %302 = vst.msk [vmem:[%s229_s22] sm:$0xf] %vm301_vm2, %v300_v10 }
 0x1bf   : > { %v307_v12 = vpop.permute.xlu0 %306 }
 0x1c0   : > { %447 = vst.msk [vmem:[%s229_s22 + $0x4] sm:$0xf] %vm301_vm2, %v307_v12 }
 0x1c1   : > { %657 = shalt.err (!%p654_p11)
}
 0x1c2   : > { %s658_s6 = scalar_lea.hbm %s971_s9, 128  ;;  %s662_s19 = scalar_lea.hbm %s1023_s3, 256 }
 0x1c3   : > { %p659_p0 = scmp.ne.s32.totalorder %s971_s9, %s658_s6  ;;  %p663_p6 = scmp.lt.u32.totalorder %s971_s9, %s1023_s3 }
 0x1c4   : > { %p664_p7 = scmp.lt.u32.totalorder %s662_s19, %s658_s6  ;;  %p666_p8 = scmp.lt.u32.totalorder %s658_s6, %s971_s9 }
 0x1c5   : > { %p660_p4 = pnand %p659_p0, %p1038_p12 }
 0x1c6   : > { %p665_p2 = por %p664_p7, %p663_p6 }
 0x1c7   : > { %p661_p13 = pneg %p660_p4 }
 0x1c8   : > { %p667_p1 = por %p666_p8, %p665_p2 }
 0x1ca   : > { %p668_p10 = pnand %p667_p1, %p661_p13 }
 0x1cc   : > { %671 = shalt.err (!%p668_p10)
}
 0x1cd   : > { %s741_s22 = smov 64   ;;  %s742_s7 = smov 4  }
 0x1ce   : > { %476 = dma.vmem_to_hbm [thread:$0]  (%p1038_p12), %s966_s24, 128, %s971_s9, %s312_s29, %s741_s22, %s741_s22, %s742_s7  }
 0x1cf PF: > { %s341_s8 = sand.u32 1, %s710_s12   ;;  %p1039_p3 = scmp.ne.s32.totalorder %s1031_s23, 0 }
 0x1d0   : > { %p1040_p5 = scmp.ge.s32.totalorder %s730_s17, 2  ;;  %s342_s26 = scalar_lea.sflag [#allocation4], %s341_s8 }
 0x1d2   : > { %p490_p9 = pnand %p1040_p5, %p1039_p3 }
 0x1d4   : > { %705 = dma.done.wait (!%p490_p9), %s342_s26, 128  }
 0x1d5   : > { %707 = vsyncadd (!%p490_p9), %s342_s26, 4294967168  ;;  %s20_s17 = sadd.s32 1, %s730_s17   ;;  %s1041_s12 = smov %s714_s13 }
 0x1d6   : > { %p17_p11 = scmp.ge.s32.totalorder %s20_s17, 4   ;;  %s1042_s13 = smov %s718_s14 }
 0x1d7   : > { %s1043_s14 = smov %s906_s4  ;;  %s1044_s15 = smov %s726_s16 }
 0x1d8   : > { %s1045_s16 = smov %s1047_s18  ;;  %19 = sbr.rel (!%p17_p11) target bundleno = 7 (0x7), region = 86 }
 0x1df   :  { %347 = vsyncpa [#allocation3], 1 }
 0x1e0   :  { %349 = vsyncpa [#allocation3 + $0x1], 1 }
 0x1e1   :  { %350 = vsyncpa [#allocation6], 1 }
 0x1e2   :  { %351 = vsyncpa [#allocation4], 1 }
 0x1e3   :  { %353 = vsyncpa [#allocation4 + $0x1], 1 }

</bundles_post_ra>
